<compile_context>
chip_gen: v7x
topology: tpu7x:2x2x1
jax: 0.10.0
libtpu: 0.0.40
codegen_flags: <defaults>
</compile_context>

<pallas_src>
import functools

import jax
import jax.numpy as jnp
from jax.experimental import pallas as pl
from jax.experimental.pallas import tpu as pltpu


BN_EPS = 1e-5
SOFTPLUS_THRESHOLD = 20.0
LANE = 128
SUBLANE = 8
MAX_NODE_TILE = 512


def _round_up(v, m):
    return ((v + m - 1) // m) * m


# --------------------------------------------------------------------------------------
# Pass 1: relational aggregation
#   h[i_tile] = x[i_tile] @ W_root + bias + sum_j sum_r A_r[i_tile, j_tile] @ (x[j_tile] @ W_r)
# plus per-row-tile BatchNorm partial statistics (sum, sum of squares) over valid rows.
# --------------------------------------------------------------------------------------
def _rgcn_agg_kernel(x_rows_ref, x_cols_ref, adj_ref, w_all_ref, w_root_ref,
                     bias_ref, h_ref, ssum_ref, ssq_ref,
                     *, n_rel, f_pad, tile_i, n_nodes):
    i = pl.program_id(0)          # node-row tile   (parallel)
    j = pl.program_id(1)          # node-column tile (reduction)

    # j == 0: initialize the VMEM-resident output tile with root transform + bias.
    @pl.when(j == 0)
    def _():
        h_ref[...] = (jnp.dot(x_rows_ref[...], w_root_ref[...],
                              preferred_element_type=jnp.float32)
                      + bias_ref[...])

    # One wide MXU matmul produces every relation's messages for this column block:
    #   msg_all = x_j @ [W_1 | W_2 | ... | W_R]   -> [TILE_J, R * F_pad]
    msg_all = jnp.dot(x_cols_ref[...], w_all_ref[...],
                      preferred_element_type=jnp.float32).astype(jnp.bfloat16)

    # Statically-unrolled loop over the (small) relation count.
    contrib = jnp.dot(adj_ref[0], msg_all[:, 0:f_pad],
                      preferred_element_type=jnp.float32)
    for r in range(1, n_rel):
        contrib += jnp.dot(adj_ref[r], msg_all[:, r * f_pad:(r + 1) * f_pad],
                           preferred_element_type=jnp.float32)
    h_ref[...] += contrib

    # Last column block: emit per-row-tile BN partial statistics (mask padded rows).
    @pl.when(j == pl.num_programs(1) - 1)
    def _():
        h = h_ref[...]
        row_ids = i * tile_i + jax.lax.broadcasted_iota(jnp.int32, (tile_i, 1), 0)
        valid = row_ids < n_nodes
        hv = jnp.where(valid, h, 0.0)
        ssum_ref[0] = jnp.sum(hv, axis=0, keepdims=True)
        ssq_ref[0] = jnp.sum(hv * hv, axis=0, keepdims=True)


# --------------------------------------------------------------------------------------
# Pass 2: finalize BatchNorm statistics, normalize, Mish.
# --------------------------------------------------------------------------------------
def _bn_mish_kernel(h_ref, ssum_ref, ssq_ref, gamma_ref, beta_ref, out_ref,
                    *, n_nodes):
    inv_n = 1.0 / float(n_nodes)
    mean = jnp.sum(ssum_ref[...], axis=0) * inv_n            # [1, F_pad]
    ex2 = jnp.sum(ssq_ref[...], axis=0) * inv_n              # [1, F_pad]
    var = ex2 - mean * mean                                  # biased variance (PyTorch BN)
    rstd = jax.lax.rsqrt(var + BN_EPS)

    h = h_ref[...]
    hn = (h - mean) * rstd * gamma_ref[...] + beta_ref[...]

    # Mish: x * tanh(softplus(x)) with PyTorch softplus threshold behavior.
    sp = jnp.where(hn > SOFTPLUS_THRESHOLD,
                   hn,
                   jnp.log1p(jnp.exp(jnp.minimum(hn, SOFTPLUS_THRESHOLD))))
    out_ref[...] = (hn * jnp.tanh(sp)).astype(out_ref.dtype)


@jax.jit
def hetero_gnn_forward(x, adj, w_rel, w_root, bias, gamma, beta):
    """x: [N, F_in], adj: [R, N, N] (mean-normalized), w_rel: [R, F_in, F_out],
    w_root: [F_in, F_out], bias/gamma/beta: [1, F_out]  ->  [N, F_out]"""
    n_nodes, in_dim = x.shape
    n_rel, _, out_dim = w_rel.shape

    f_in_pad = _round_up(in_dim, LANE)
    f_pad = _round_up(out_dim, LANE)
    n_pad8 = _round_up(n_nodes, SUBLANE)
    tile_n = min(MAX_NODE_TILE, n_pad8)
    n_pad = _round_up(n_pad8, tile_n)
    n_tiles = n_pad // tile_n

    f32, bf16 = jnp.float32, jnp.bfloat16

    # Zero-pad to lane-dense shapes; cast heavy matmul operands to bf16.
    x_p = jnp.zeros((n_pad, f_in_pad), f32).at[:n_nodes, :in_dim].set(x).astype(bf16)
    adj_p = (jnp.zeros((n_rel, n_pad, n_pad), f32)
             .at[:, :n_nodes, :n_nodes].set(adj).astype(bf16))
    w_all = jnp.zeros((n_rel, f_in_pad, f_pad), f32).at[:, :in_dim, :out_dim].set(w_rel)
    w_all = jnp.transpose(w_all, (1, 0, 2)).reshape(f_in_pad, n_rel * f_pad).astype(bf16)
    w_root_p = (jnp.zeros((f_in_pad, f_pad), f32)
                .at[:in_dim, :out_dim].set(w_root).astype(bf16))
    bias_p = jnp.zeros((1, f_pad), f32).at[:, :out_dim].set(bias)
    gamma_p = jnp.zeros((1, f_pad), f32).at[:, :out_dim].set(gamma)
    beta_p = jnp.zeros((1, f_pad), f32).at[:, :out_dim].set(beta)

    # ---------------- Pass 1: relational aggregation + BN partial stats ----------------
    h, ssum, ssq = pl.pallas_call(
        functools.partial(_rgcn_agg_kernel, n_rel=n_rel, f_pad=f_pad,
                          tile_i=tile_n, n_nodes=n_nodes),
        out_shape=(
            jax.ShapeDtypeStruct((n_pad, f_pad), f32),            # pre-BN activations
            jax.ShapeDtypeStruct((n_tiles, 1, f_pad), f32),       # per-tile sum
            jax.ShapeDtypeStruct((n_tiles, 1, f_pad), f32),       # per-tile sum of squares
        ),
        grid_spec=pltpu.PrefetchScalarGridSpec(
            num_scalar_prefetch=0,
            grid=(n_tiles, n_tiles),
            in_specs=[
                pl.BlockSpec((tile_n, f_in_pad), lambda i, j: (i, 0)),        # x (root rows)
                pl.BlockSpec((tile_n, f_in_pad), lambda i, j: (j, 0)),        # x (message rows)
                pl.BlockSpec((n_rel, tile_n, tile_n), lambda i, j: (0, i, j)),  # adj tile
                pl.BlockSpec((f_in_pad, n_rel * f_pad), lambda i, j: (0, 0)),   # W_all (fused)
                pl.BlockSpec((f_in_pad, f_pad), lambda i, j: (0, 0)),         # W_root
                pl.BlockSpec((1, f_pad), lambda i, j: (0, 0)),                # bias
            ],
            out_specs=[
                pl.BlockSpec((tile_n, f_pad), lambda i, j: (i, 0)),           # h
                pl.BlockSpec((1, 1, f_pad), lambda i, j: (i, 0, 0)),          # sum
                pl.BlockSpec((1, 1, f_pad), lambda i, j: (i, 0, 0)),          # sumsq
            ],
        ),
        compiler_params=pltpu.CompilerParams(
            dimension_semantics=("parallel", "arbitrary")),
    )(x_p, x_p, adj_p, w_all, w_root_p, bias_p)

    # ---------------- Pass 2: BN finalize + Mish ----------------
    out_pad = pl.pallas_call(
        functools.partial(_bn_mish_kernel, n_nodes=n_nodes),
        out_shape=jax.ShapeDtypeStruct((n_pad, f_pad), x.dtype),
        grid_spec=pltpu.PrefetchScalarGridSpec(
            num_scalar_prefetch=0,
            grid=(n_tiles,),
            in_specs=[
                pl.BlockSpec((tile_n, f_pad), lambda i: (i, 0)),      # h tile
                pl.BlockSpec((n_tiles, 1, f_pad), lambda i: (0, 0, 0)),  # all partial sums
                pl.BlockSpec((n_tiles, 1, f_pad), lambda i: (0, 0, 0)),  # all partial sumsqs
                pl.BlockSpec((1, f_pad), lambda i: (0, 0)),           # gamma
                pl.BlockSpec((1, f_pad), lambda i: (0, 0)),           # beta
            ],
            out_specs=pl.BlockSpec((tile_n, f_pad), lambda i: (i, 0)),
        ),
        compiler_params=pltpu.CompilerParams(
            dimension_semantics=("parallel",)),
    )(h, ssum, ssq, gamma_p, beta_p)

    return out_pad[:n_nodes, :out_dim]


# --------------------------------------------------------------------------------------
# Plain-JAX glue + reference
# --------------------------------------------------------------------------------------
def build_relation_adjacency(edge_index, edge_type, n_nodes, n_relations):
    """Dense per-relation mean-normalized adjacency from COO edges.

    edge_index: [2, E] int32 (row 0 = source, row 1 = target, PyG convention)
    edge_type:  [E] int32
    returns adj: [R, N, N] float32, adj[r, i, j] = count(j->i, r) / deg_r(i)
    """
    src = edge_index[0]
    dst = edge_index[1]
    adj = jnp.zeros((n_relations, n_nodes, n_nodes), jnp.float32)
    adj = adj.at[edge_type, dst, src].add(1.0)
    deg = adj.sum(axis=-1, keepdims=True)
    adj = jnp.where(deg > 0, adj / jnp.maximum(deg, 1.0), 0.0)
    return adj


def init_params(key, in_dim, out_dim, n_relations):
    k_rel, k_root = jax.random.split(key)
    scale = 1.0 / jnp.sqrt(jnp.float32(in_dim))
    w_rel = jax.random.normal(k_rel, (n_relations, in_dim, out_dim), jnp.float32) * scale
    w_root = jax.random.normal(k_root, (in_dim, out_dim), jnp.float32) * scale
    bias = jnp.zeros((1, out_dim), jnp.float32)    # RGCNConv bias init: zeros
    gamma = jnp.ones((1, out_dim), jnp.float32)    # BatchNorm1d weight init: ones
    beta = jnp.zeros((1, out_dim), jnp.float32)    # BatchNorm1d bias init: zeros
    return w_rel, w_root, bias, gamma, beta


def reference_forward(x, adj, w_rel, w_root, bias, gamma, beta):
    """Pure-JAX f32 reference."""
    h = x @ w_root + bias
    h = h + jnp.einsum("rij,jk,rkl->il", adj, x, w_rel)
    mean = jnp.mean(h, axis=0, keepdims=True)
    var = jnp.mean((h - mean) ** 2, axis=0, keepdims=True)
    h = (h - mean) / jnp.sqrt(var + BN_EPS) * gamma + beta
    sp = jnp.where(h > SOFTPLUS_THRESHOLD, h,
                   jnp.log1p(jnp.exp(jnp.minimum(h, SOFTPLUS_THRESHOLD))))
    return h * jnp.tanh(sp)


if __name__ == "__main__":
    key = jax.random.PRNGKey(0)
    k_x, k_src, k_dst, k_type, k_param = jax.random.split(key, 5)

    N_NODES = 32
    IN_DIM = 16
    OUT_DIM = 32
    N_RELATIONS = 3
    N_EDGES = 64

    x = jax.random.normal(k_x, (N_NODES, IN_DIM), jnp.float32)
    src = jax.random.randint(k_src, (N_EDGES,), 0, N_NODES, jnp.int32)
    dst = jax.random.randint(k_dst, (N_EDGES,), 0, N_NODES, jnp.int32)
    edge_index = jnp.stack([src, dst], axis=0)                 # [2, E]
    edge_type = jax.random.randint(k_type, (N_EDGES,), 0, N_RELATIONS, jnp.int32)

    adj = build_relation_adjacency(edge_index, edge_type, N_NODES, N_RELATIONS)
    w_rel, w_root, bias, gamma, beta = init_params(k_param, IN_DIM, OUT_DIM, N_RELATIONS)

    out = hetero_gnn_forward(x, adj, w_rel, w_root, bias, gamma, beta)
    out = jax.block_until_ready(out)

    ref = reference_forward(x, adj, w_rel, w_root, bias, gamma, beta)
    assert out.shape == (N_NODES, OUT_DIM)
    # Kernel runs the heavy matmuls in bf16 (f32 accumulation); compare against the
    # f32 reference with a bf16-appropriate tolerance.
    assert jnp.allclose(out, ref, atol=5e-2, rtol=5e-2), "mismatch vs reference"

    print("KERNEL_OK")
</pallas_src>

<mosaic_0001>
module attributes {stable_mosaic.version = 11 : i64} {
  func.func @_rgcn_agg_kernel(%arg0: i32, %arg1: i32, %arg2: memref<32x128xbf16, #tpu.memory_space<vmem>>, %arg3: memref<32x128xbf16, #tpu.memory_space<vmem>>, %arg4: memref<3x32x32xbf16, #tpu.memory_space<vmem>>, %arg5: memref<128x384xbf16, #tpu.memory_space<vmem>>, %arg6: memref<128x128xbf16, #tpu.memory_space<vmem>>, %arg7: memref<1x128xf32, #tpu.memory_space<vmem>>, %arg8: memref<32x128xf32, #tpu.memory_space<vmem>>, %arg9: memref<1x1x128xf32, #tpu.memory_space<vmem>>, %arg10: memref<1x1x128xf32, #tpu.memory_space<vmem>>) attributes {dimension_semantics = [#tpu.dimension_semantics<parallel>, #tpu.dimension_semantics<arbitrary>], iteration_bounds = array<i64: 1, 1>, scalar_prefetch = 0 : i64, scratch_operands = 0 : i64, tpu.core_type = #tpu.core_type<tc>, window_params = [{transform_indices = @transform_0, window_bounds = array<i64: 32, 128>}, {transform_indices = @transform_1, window_bounds = array<i64: 32, 128>}, {transform_indices = @transform_2, window_bounds = array<i64: 3, 32, 32>}, {pipeline_mode = #tpu.pipeline_mode<synchronous>, transform_indices = @transform_3, window_bounds = array<i64: 128, 384>}, {pipeline_mode = #tpu.pipeline_mode<synchronous>, transform_indices = @transform_4, window_bounds = array<i64: 128, 128>}, {pipeline_mode = #tpu.pipeline_mode<synchronous>, transform_indices = @transform_5, window_bounds = array<i64: 1, 128>}, {transform_indices = @transform_6, window_bounds = array<i64: 32, 128>}, {transform_indices = @transform_7, window_bounds = array<i64: 1, 1, 128>}, {transform_indices = @transform_8, window_bounds = array<i64: 1, 1, 128>}]} {
    %c0_i32 = arith.constant 0 : i32
    %0 = arith.cmpi eq, %arg1, %c0_i32 : i32
    %1 = arith.extui %0 : i1 to i32
    %c0_i32_0 = arith.constant 0 : i32
    %2 = arith.cmpi ne, %1, %c0_i32_0 : i32
    scf.if %2 {
      %c0_20 = arith.constant 0 : index
      %c0_21 = arith.constant 0 : index
      %27 = vector.load %arg2[%c0_20, %c0_21] : memref<32x128xbf16, #tpu.memory_space<vmem>>, vector<32x128xbf16>
      %c0_22 = arith.constant 0 : index
      %c0_23 = arith.constant 0 : index
      %28 = vector.load %arg6[%c0_22, %c0_23] : memref<128x128xbf16, #tpu.memory_space<vmem>>, vector<128x128xbf16>
      %cst_24 = arith.constant dense<0.000000e+00> : vector<32x128xf32>
      %29 = tpu.matmul %27, %28, %cst_24 {dimension_numbers = #tpu.dot_dimension_numbers<[1], [0], [0], [1], [0, 0, 1, 1], [], []>} : vector<32x128xbf16>, vector<128x128xbf16>, vector<32x128xf32> -> vector<32x128xf32>
      %c0_25 = arith.constant 0 : index
      %c0_26 = arith.constant 0 : index
      %30 = vector.load %arg7[%c0_25, %c0_26] : memref<1x128xf32, #tpu.memory_space<vmem>>, vector<1x128xf32>
      %31 = vector.broadcast %30 : vector<1x128xf32> to vector<32x128xf32>
      %32 = arith.addf %29, %31 : vector<32x128xf32>
      %c0_27 = arith.constant 0 : index
      %c0_28 = arith.constant 0 : index
      %33 = vector.load %arg8[%c0_27, %c0_28] : memref<32x128xf32, #tpu.memory_space<vmem>>, vector<32x128xf32>
      tpu.vector_store %arg8[%c0_27, %c0_28], %32 {strides = array<i32>} : memref<32x128xf32, #tpu.memory_space<vmem>>, vector<32x128xf32>,
    } else {
    }
    %c0 = arith.constant 0 : index
    %c0_1 = arith.constant 0 : index
    %3 = vector.load %arg3[%c0, %c0_1] : memref<32x128xbf16, #tpu.memory_space<vmem>>, vector<32x128xbf16>
    %c0_2 = arith.constant 0 : index
    %c0_3 = arith.constant 0 : index
    %4 = vector.load %arg5[%c0_2, %c0_3] : memref<128x384xbf16, #tpu.memory_space<vmem>>, vector<128x384xbf16>
    %cst = arith.constant dense<0.000000e+00> : vector<32x384xf32>
    %5 = tpu.matmul %3, %4, %cst {dimension_numbers = #tpu.dot_dimension_numbers<[1], [0], [0], [1], [0, 0, 1, 1], [], []>} : vector<32x128xbf16>, vector<128x384xbf16>, vector<32x384xf32> -> vector<32x384xf32>
    %6 = arith.truncf %5 : vector<32x384xf32> to vector<32x384xbf16>
    %c0_4 = arith.constant 0 : index
    %c0_5 = arith.constant 0 : index
    %c0_6 = arith.constant 0 : index
    %7 = vector.load %arg4[%c0_4, %c0_5, %c0_6] : memref<3x32x32xbf16, #tpu.memory_space<vmem>>, vector<1x32x32xbf16>
    %8 = vector.shape_cast %7 : vector<1x32x32xbf16> to vector<32x32xbf16>
    %9 = vector.extract_strided_slice %6 {offsets = [0, 0], sizes = [32, 128], strides = [1, 1]} : vector<32x384xbf16> to vector<32x128xbf16>
    %cst_7 = arith.constant dense<0.000000e+00> : vector<32x128xf32>
    %10 = tpu.matmul %8, %9, %cst_7 {dimension_numbers = #tpu.dot_dimension_numbers<[1], [0], [0], [1], [0, 0, 1, 1], [], []>} : vector<32x32xbf16>, vector<32x128xbf16>, vector<32x128xf32> -> vector<32x128xf32>
    %c1 = arith.constant 1 : index
    %c0_8 = arith.constant 0 : index
    %c0_9 = arith.constant 0 : index
    %11 = vector.load %arg4[%c1, %c0_8, %c0_9] : memref<3x32x32xbf16, #tpu.memory_space<vmem>>, vector<1x32x32xbf16>
    %12 = vector.shape_cast %11 : vector<1x32x32xbf16> to vector<32x32xbf16>
    %13 = vector.extract_strided_slice %6 {offsets = [0, 128], sizes = [32, 128], strides = [1, 1]} : vector<32x384xbf16> to vector<32x128xbf16>
    %cst_10 = arith.constant dense<0.000000e+00> : vector<32x128xf32>
    %14 = tpu.matmul %12, %13, %cst_10 {dimension_numbers = #tpu.dot_dimension_numbers<[1], [0], [0], [1], [0, 0, 1, 1], [], []>} : vector<32x32xbf16>, vector<32x128xbf16>, vector<32x128xf32> -> vector<32x128xf32>
    %15 = arith.addf %10, %14 : vector<32x128xf32>
    %c2 = arith.constant 2 : index
    %c0_11 = arith.constant 0 : index
    %c0_12 = arith.constant 0 : index
    %16 = vector.load %arg4[%c2, %c0_11, %c0_12] : memref<3x32x32xbf16, #tpu.memory_space<vmem>>, vector<1x32x32xbf16>
    %17 = vector.shape_cast %16 : vector<1x32x32xbf16> to vector<32x32xbf16>
    %18 = vector.extract_strided_slice %6 {offsets = [0, 256], sizes = [32, 128], strides = [1, 1]} : vector<32x384xbf16> to vector<32x128xbf16>
    %cst_13 = arith.constant dense<0.000000e+00> : vector<32x128xf32>
    %19 = tpu.matmul %17, %18, %cst_13 {dimension_numbers = #tpu.dot_dimension_numbers<[1], [0], [0], [1], [0, 0, 1, 1], [], []>} : vector<32x32xbf16>, vector<32x128xbf16>, vector<32x128xf32> -> vector<32x128xf32>
    %20 = arith.addf %15, %19 : vector<32x128xf32>
    %c0_14 = arith.constant 0 : index
    %c0_15 = arith.constant 0 : index
    %21 = vector.load %arg8[%c0_14, %c0_15] : memref<32x128xf32, #tpu.memory_space<vmem>>, vector<32x128xf32>
    %22 = arith.addf %21, %20 : vector<32x128xf32>
    %c0_16 = arith.constant 0 : index
    %c0_17 = arith.constant 0 : index
    %23 = vector.load %arg8[%c0_16, %c0_17] : memref<32x128xf32, #tpu.memory_space<vmem>>, vector<32x128xf32>
    tpu.vector_store %arg8[%c0_16, %c0_17], %22 {strides = array<i32>} : memref<32x128xf32, #tpu.memory_space<vmem>>, vector<32x128xf32>,
    %c0_i32_18 = arith.constant 0 : i32
    %24 = arith.cmpi eq, %arg1, %c0_i32_18 : i32
    %25 = arith.extui %24 : i1 to i32
    %c0_i32_19 = arith.constant 0 : i32
    %26 = arith.cmpi ne, %25, %c0_i32_19 : i32
    scf.if %26 {
      %c0_20 = arith.constant 0 : index
      %c0_21 = arith.constant 0 : index
      %27 = vector.load %arg8[%c0_20, %c0_21] : memref<32x128xf32, #tpu.memory_space<vmem>>, vector<32x128xf32>
      %c32_i32 = arith.constant 32 : i32
      %28 = arith.muli %arg0, %c32_i32 : i32
      %29 = tpu.iota {dimensions = array<i32: 0>} : vector<32x1xi32>
      %30 = vector.broadcast %28 : i32 to vector<32x1xi32>
      %31 = arith.addi %30, %29 : vector<32x1xi32>
      %c32_i32_22 = arith.constant 32 : i32
      %32 = vector.broadcast %c32_i32_22 : i32 to vector<32x1xi32>
      %33 = arith.cmpi slt, %31, %32 : vector<32x1xi32>
      %cst_23 = arith.constant 0.000000e+00 : f32
      %34 = vector.shape_cast %33 : vector<32x1xi1> to vector<32x1xi1>
      %35 = vector.broadcast %34 : vector<32x1xi1> to vector<32x128xi1>
      %36 = vector.broadcast %cst_23 : f32 to vector<32x128xf32>
      %37 = arith.select %35, %27, %36 : vector<32x128xi1>, vector<32x128xf32>
      %cst_24 = arith.constant dense<0.000000e+00> : vector<128xf32>
      %38 = vector.multi_reduction <add>, %37, %cst_24 [0] : vector<32x128xf32> to vector<128xf32>
      %39 = vector.shape_cast %38 : vector<128xf32> to vector<1x128xf32>
      %c0_25 = arith.constant 0 : index
      %c0_26 = arith.constant 0 : index
      %c0_27 = arith.constant 0 : index
      %40 = vector.load %arg9[%c0_25, %c0_26, %c0_27] : memref<1x1x128xf32, #tpu.memory_space<vmem>>, vector<1x1x128xf32>
      %41 = vector.shape_cast %40 : vector<1x1x128xf32> to vector<1x128xf32>
      %42 = vector.shape_cast %39 : vector<1x128xf32> to vector<1x1x128xf32>
      tpu.vector_store %arg9[%c0_25, %c0_26, %c0_27], %42 {strides = array<i32>} : memref<1x1x128xf32, #tpu.memory_space<vmem>>, vector<1x1x128xf32>,
      %43 = arith.mulf %37, %37 : vector<32x128xf32>
      %cst_28 = arith.constant dense<0.000000e+00> : vector<128xf32>
      %44 = vector.multi_reduction <add>, %43, %cst_28 [0] : vector<32x128xf32> to vector<128xf32>
      %45 = vector.shape_cast %44 : vector<128xf32> to vector<1x128xf32>
      %c0_29 = arith.constant 0 : index
      %c0_30 = arith.constant 0 : index
      %c0_31 = arith.constant 0 : index
      %46 = vector.load %arg10[%c0_29, %c0_30, %c0_31] : memref<1x1x128xf32, #tpu.memory_space<vmem>>, vector<1x1x128xf32>
      %47 = vector.shape_cast %46 : vector<1x1x128xf32> to vector<1x128xf32>
      %48 = vector.shape_cast %45 : vector<1x128xf32> to vector<1x1x128xf32>
      tpu.vector_store %arg10[%c0_29, %c0_30, %c0_31], %48 {strides = array<i32>} : memref<1x1x128xf32, #tpu.memory_space<vmem>>, vector<1x1x128xf32>,
    } else {
    }
    return
  }
  func.func @transform_0(%arg0: i32, %arg1: i32) -> (i32, i32) {
    %c0_i32 = arith.constant 0 : i32
    %c0_i32_0 = arith.constant 0 : i32
    return %arg0, %c0_i32 : i32, i32
  }
  func.func @transform_1(%arg0: i32, %arg1: i32) -> (i32, i32) {
    %c0_i32 = arith.constant 0 : i32
    %c0_i32_0 = arith.constant 0 : i32
    return %arg1, %c0_i32 : i32, i32
  }
  func.func @transform_2(%arg0: i32, %arg1: i32) -> (i32, i32, i32) {
    %c0_i32 = arith.constant 0 : i32
    %c0_i32_0 = arith.constant 0 : i32
    return %c0_i32, %arg0, %arg1 : i32, i32, i32
  }
  func.func @transform_3(%arg0: i32, %arg1: i32) -> (i32, i32) {
    %c0_i32 = arith.constant 0 : i32
    %c0_i32_0 = arith.constant 0 : i32
    %c0_i32_1 = arith.constant 0 : i32
    return %c0_i32, %c0_i32_0 : i32, i32
  }
  func.func @transform_4(%arg0: i32, %arg1: i32) -> (i32, i32) {
    %c0_i32 = arith.constant 0 : i32
    %c0_i32_0 = arith.constant 0 : i32
    %c0_i32_1 = arith.constant 0 : i32
    return %c0_i32, %c0_i32_0 : i32, i32
  }
  func.func @transform_5(%arg0: i32, %arg1: i32) -> (i32, i32) {
    %c0_i32 = arith.constant 0 : i32
    %c0_i32_0 = arith.constant 0 : i32
    %c0_i32_1 = arith.constant 0 : i32
    return %c0_i32, %c0_i32_0 : i32, i32
  }
  func.func @transform_6(%arg0: i32, %arg1: i32) -> (i32, i32) {
    %c0_i32 = arith.constant 0 : i32
    %c0_i32_0 = arith.constant 0 : i32
    return %arg0, %c0_i32 : i32, i32
  }
  func.func @transform_7(%arg0: i32, %arg1: i32) -> (i32, i32, i32) {
    %c0_i32 = arith.constant 0 : i32
    %c0_i32_0 = arith.constant 0 : i32
    %c0_i32_1 = arith.constant 0 : i32
    return %arg0, %c0_i32, %c0_i32_0 : i32, i32, i32
  }
  func.func @transform_8(%arg0: i32, %arg1: i32) -> (i32, i32, i32) {
    %c0_i32 = arith.constant 0 : i32
    %c0_i32_0 = arith.constant 0 : i32
    %c0_i32_1 = arith.constant 0 : i32
    return %arg0, %c0_i32, %c0_i32_0 : i32, i32, i32
  }
}

module attributes {stable_mosaic.version = 11 : i64} {
  func.func @_bn_mish_kernel(%arg0: i32, %arg1: memref<32x128xf32, #tpu.memory_space<vmem>>, %arg2: memref<1x1x128xf32, #tpu.memory_space<vmem>>, %arg3: memref<1x1x128xf32, #tpu.memory_space<vmem>>, %arg4: memref<1x128xf32, #tpu.memory_space<vmem>>, %arg5: memref<1x128xf32, #tpu.memory_space<vmem>>, %arg6: memref<32x128xf32, #tpu.memory_space<vmem>>) attributes {dimension_semantics = [#tpu.dimension_semantics<parallel>], iteration_bounds = array<i64: 1>, scalar_prefetch = 0 : i64, scratch_operands = 0 : i64, tpu.core_type = #tpu.core_type<tc>, window_params = [{transform_indices = @transform_0, window_bounds = array<i64: 32, 128>}, {pipeline_mode = #tpu.pipeline_mode<synchronous>, transform_indices = @transform_1, window_bounds = array<i64: 1, 1, 128>}, {pipeline_mode = #tpu.pipeline_mode<synchronous>, transform_indices = @transform_2, window_bounds = array<i64: 1, 1, 128>}, {pipeline_mode = #tpu.pipeline_mode<synchronous>, transform_indices = @transform_3, window_bounds = array<i64: 1, 128>}, {pipeline_mode = #tpu.pipeline_mode<synchronous>, transform_indices = @transform_4, window_bounds = array<i64: 1, 128>}, {transform_indices = @transform_5, window_bounds = array<i64: 32, 128>}]} {
    %c0 = arith.constant 0 : index
    %c0_0 = arith.constant 0 : index
    %c0_1 = arith.constant 0 : index
    %0 = vector.load %arg2[%c0, %c0_0, %c0_1] : memref<1x1x128xf32, #tpu.memory_space<vmem>>, vector<1x1x128xf32>
    %cst = arith.constant dense<0.000000e+00> : vector<1x128xf32>
    %1 = vector.multi_reduction <add>, %0, %cst [0] : vector<1x1x128xf32> to vector<1x128xf32>
    %cst_2 = arith.constant 3.125000e-02 : f32
    %2 = vector.broadcast %cst_2 : f32 to vector<1x128xf32>
    %3 = arith.mulf %1, %2 : vector<1x128xf32>
    %c0_3 = arith.constant 0 : index
    %c0_4 = arith.constant 0 : index
    %c0_5 = arith.constant 0 : index
    %4 = vector.load %arg3[%c0_3, %c0_4, %c0_5] : memref<1x1x128xf32, #tpu.memory_space<vmem>>, vector<1x1x128xf32>
    %cst_6 = arith.constant dense<0.000000e+00> : vector<1x128xf32>
    %5 = vector.multi_reduction <add>, %4, %cst_6 [0] : vector<1x1x128xf32> to vector<1x128xf32>
    %cst_7 = arith.constant 3.125000e-02 : f32
    %6 = vector.broadcast %cst_7 : f32 to vector<1x128xf32>
    %7 = arith.mulf %5, %6 : vector<1x128xf32>
    %8 = arith.mulf %3, %3 : vector<1x128xf32>
    %9 = arith.subf %7, %8 : vector<1x128xf32>
    %cst_8 = arith.constant 9.99999974E-6 : f32
    %10 = vector.broadcast %cst_8 : f32 to vector<1x128xf32>
    %11 = arith.addf %9, %10 : vector<1x128xf32>
    %12 = math.rsqrt %11 : vector<1x128xf32>
    %c0_9 = arith.constant 0 : index
    %c0_10 = arith.constant 0 : index
    %13 = vector.load %arg1[%c0_9, %c0_10] : memref<32x128xf32, #tpu.memory_space<vmem>>, vector<32x128xf32>
    %14 = vector.broadcast %3 : vector<1x128xf32> to vector<32x128xf32>
    %15 = arith.subf %13, %14 : vector<32x128xf32>
    %16 = vector.broadcast %12 : vector<1x128xf32> to vector<32x128xf32>
    %17 = arith.mulf %15, %16 : vector<32x128xf32>
    %c0_11 = arith.constant 0 : index
    %c0_12 = arith.constant 0 : index
    %18 = vector.load %arg4[%c0_11, %c0_12] : memref<1x128xf32, #tpu.memory_space<vmem>>, vector<1x128xf32>
    %19 = vector.broadcast %18 : vector<1x128xf32> to vector<32x128xf32>
    %20 = arith.mulf %17, %19 : vector<32x128xf32>
    %c0_13 = arith.constant 0 : index
    %c0_14 = arith.constant 0 : index
    %21 = vector.load %arg5[%c0_13, %c0_14] : memref<1x128xf32, #tpu.memory_space<vmem>>, vector<1x128xf32>
    %22 = vector.broadcast %21 : vector<1x128xf32> to vector<32x128xf32>
    %23 = arith.addf %20, %22 : vector<32x128xf32>
    %cst_15 = arith.constant 2.000000e+01 : f32
    %24 = vector.broadcast %cst_15 : f32 to vector<32x128xf32>
    %25 = arith.cmpf ogt, %23, %24 : vector<32x128xf32>
    %cst_16 = arith.constant 2.000000e+01 : f32
    %26 = vector.broadcast %cst_16 : f32 to vector<32x128xf32>
    %27 = arith.minimumf %23, %26 : vector<32x128xf32>
    %28 = math.exp %27 : vector<32x128xf32>
    %29 = math.log1p %28 : vector<32x128xf32>
    %30 = arith.select %25, %23, %29 : vector<32x128xi1>, vector<32x128xf32>
    %31 = math.tanh %30 : vector<32x128xf32>
    %32 = arith.mulf %23, %31 : vector<32x128xf32>
    %c0_17 = arith.constant 0 : index
    %c0_18 = arith.constant 0 : index
    %33 = vector.load %arg6[%c0_17, %c0_18] : memref<32x128xf32, #tpu.memory_space<vmem>>, vector<32x128xf32>
    tpu.vector_store %arg6[%c0_17, %c0_18], %32 {strides = array<i32>} : memref<32x128xf32, #tpu.memory_space<vmem>>, vector<32x128xf32>,
    return
  }
  func.func @transform_0(%arg0: i32) -> (i32, i32) {
    %c0_i32 = arith.constant 0 : i32
    %c0_i32_0 = arith.constant 0 : i32
    return %arg0, %c0_i32 : i32, i32
  }
  func.func @transform_1(%arg0: i32) -> (i32, i32, i32) {
    %c0_i32 = arith.constant 0 : i32
    %c0_i32_0 = arith.constant 0 : i32
    %c0_i32_1 = arith.constant 0 : i32
    %c0_i32_2 = arith.constant 0 : i32
    return %c0_i32, %c0_i32_0, %c0_i32_1 : i32, i32, i32
  }
  func.func @transform_2(%arg0: i32) -> (i32, i32, i32) {
    %c0_i32 = arith.constant 0 : i32
    %c0_i32_0 = arith.constant 0 : i32
    %c0_i32_1 = arith.constant 0 : i32
    %c0_i32_2 = arith.constant 0 : i32
    return %c0_i32, %c0_i32_0, %c0_i32_1 : i32, i32, i32
  }
  func.func @transform_3(%arg0: i32) -> (i32, i32) {
    %c0_i32 = arith.constant 0 : i32
    %c0_i32_0 = arith.constant 0 : i32
    %c0_i32_1 = arith.constant 0 : i32
    return %c0_i32, %c0_i32_0 : i32, i32
  }
  func.func @transform_4(%arg0: i32) -> (i32, i32) {
    %c0_i32 = arith.constant 0 : i32
    %c0_i32_0 = arith.constant 0 : i32
    %c0_i32_1 = arith.constant 0 : i32
    return %c0_i32, %c0_i32_0 : i32, i32
  }
  func.func @transform_5(%arg0: i32) -> (i32, i32) {
    %c0_i32 = arith.constant 0 : i32
    %c0_i32_0 = arith.constant 0 : i32
    return %arg0, %c0_i32 : i32, i32
  }
}

</mosaic_0001>

<bundles_post_ra>
// kernel: hetero_gnn_forward.3
= control target key start
LH: loop header
LB: loop body
LE: loop exit
PB: predicated region body
PF: predicated region fallthrough
CT: control target
= control target key end

     0   :  { %v36_v4 = vlaneseq  ;;  %s327_s0 = inlined_call_operand.vmem [shape: f32[32,128], index: 0, kind: input, shape index: {}]   ;;  %s328_s1 = inlined_call_operand.vmem [shape: f32[1,1,128], index: 1, kind: input, shape index: {}]   ;;  %s329_s2 = inlined_call_operand.vmem [shape: f32[1,1,128], index: 2, kind: input, shape index: {}]   ;;  %s330_s3 = inlined_call_operand.vmem [shape: f32[1,128], index: 3, kind: input, shape index: {}]   ;;  %s331_s4 = inlined_call_operand.vmem [shape: f32[1,128], index: 4, kind: input, shape index: {}]   ;;  %s332_s5 = inlined_call_operand.hbm [shape: f32[32,128], index: 5, kind: output, shape index: {}]  }
   0x1   :  { %v21_v0 = vld [vmem:[%s328_s1] sm:$0x1] }
   0x2   :  { %v24_v1 = vld [vmem:[%s329_s2] sm:$0x1]  ;;  %v23_v2 = vmul.f32 0.03125, %v21_v0 }
   0x3   :  { %v26_v3 = vmul.f32 0.03125, %v24_v1 }
   0x4   :  { %v27_v5 = vmul.f32 %v23_v2, %v23_v2 }
   0x5   :  { %10 = vsyncpa [#allocation3], 0  ;;  %v37_v7 = vshrl.u32 %v36_v4, 7  ;;  %v31_v10 = vld [vmem:[%s327_s0] sm:$0xff]  ;;  %v32_v12 = vld [vmem:[%s327_s0 + $0x8] sm:$0xff] }
   0x6   :  { %v28_v6 = vsub.f32 %v26_v3, %v27_v5  ;;  %v33_v13 = vld [vmem:[%s327_s0 + $0x10] sm:$0xff]  ;;  %v34_v14 = vld [vmem:[%s327_s0 + $0x18] sm:$0xff]  ;;  %v161_v21 = vld [vmem:[%s330_s3] ss:$0 sm:$0xff]  ;;  %s216_s0 = smov [#allocation2]  }
   0x7   :  { %v38_v9 = vsub.s32 0, %v37_v7  ;;  %v162_v26 = vld [vmem:[%s331_s4] ss:$0 sm:$0xff]  ;;  %s150_s3 = sshll.u32 %s216_s0, 4  ;;  %s151_s3 = int_to_ptr.vmem [resolvable:$true] %s150_s3 }
   0x8   :  { %v29_v8 = vadd.f32 1e-05, %v28_v6  ;;  %s192_s4 = scalar_lea.vmem %s151_s3, 512  ;;  %p197_p1 = scmp.lt.s32.totalorder %s151_s3, %s151_s3 }
   0x9   :  { %v39_v11 = vrot.slane %v23_v2, %v38_v9  ;;  %p193_p0 = scmp.ne.s32.totalorder %s151_s3, %s192_s4  ;;  %p198_p2 = scmp.lt.s32.totalorder %s192_s4, %s192_s4 }
   0xa   :  { %166 = vrsqrt.f32 %v29_v8 }
   0xb   :  { %v41_v15 = vsub.f32 %v31_v10, %v39_v11  ;;  %v42_v16 = vsub.f32 %v32_v12, %v39_v11  ;;  %v43_v17 = vsub.f32 %v33_v13, %v39_v11  ;;  %v44_v18 = vsub.f32 %v34_v14, %v39_v11  ;;  %p199_p3 = por %p198_p2, %p197_p1 }
   0xd   :  { %p200_p4 = pnand %p199_p3, %p193_p0 }
  0x14   :  { %v167_v19 = vpop.eup %166 }
  0x15   :  { %v49_v20 = vrot.slane %v167_v19, %v38_v9 }
  0x17   :  { %v51_v22 = vmul.f32 %v49_v20, %v41_v15  ;;  %v52_v23 = vmul.f32 %v49_v20, %v42_v16  ;;  %v53_v24 = vmul.f32 %v49_v20, %v43_v17  ;;  %v54_v25 = vmul.f32 %v49_v20, %v44_v18 }
  0x19   :  { %v62_v27 = vmul.f32 %v161_v21, %v51_v22  ;;  %v63_v28 = vmul.f32 %v161_v21, %v52_v23  ;;  %v64_v29 = vmul.f32 %v161_v21, %v53_v24  ;;  %v65_v30 = vmul.f32 %v161_v21, %v54_v25 }
  0x1b   :  { %v273_v31 = vadd.f32 %v162_v26, %v62_v27  ;;  %v275_v32 = vadd.f32 %v162_v26, %v63_v28  ;;  %v277_v33 = vadd.f32 %v162_v26, %v64_v29  ;;  %v279_v34 = vadd.f32 %v162_v26, %v65_v30 }
  0x1d   :  { %v81_v35 = vmin.f32 %v273_v31, 20.0  ;;  %v82_v36 = vmin.f32 %v275_v32, 20.0  ;;  %v83_v37 = vmin.f32 %v277_v33, 20.0  ;;  %v84_v38 = vmin.f32 %v279_v34, 20.0 }
  0x1e   :  { %vm77_vm1 = vcmp.gt.f32.partialorder %v273_v31, 20.0  ;;  %vm78_vm3 = vcmp.gt.f32.partialorder %v275_v32, 20.0  ;;  %vm79_vm5 = vcmp.gt.f32.partialorder %v277_v33, 20.0  ;;  %vm80_vm6 = vcmp.gt.f32.partialorder %v279_v34, 20.0 }
  0x1f   :  { %v85_v39 = vmul.f32 1.442695, %v81_v35  ;;  %v87_v40 = vmul.f32 1.442695, %v82_v36  ;;  %v89_v41 = vmul.f32 1.442695, %v83_v37 }
  0x20   :  { %v91_v42 = vmul.f32 1.442695, %v84_v38 }
  0x21   :  { %168 = vpow2.f32 %v85_v39 }
  0x22   :  { %170 = vpow2.f32 %v87_v40 }
  0x23   :  { %172 = vpow2.f32 %v89_v41 }
  0x24   :  { %174 = vpow2.f32 %v91_v42 }
  0x2b   :  { %v169_v43 = vpop.eup %168 }
  0x2c   :  { %v171_v44 = vpop.eup %170  ;;  %v93_v45 = vadd.f32 1.0, %v169_v43  ;;  %v96_v50 = vmul.f32 -0.5, %v169_v43  ;;  %v99_v56 = vand.u32 2147483647, %v169_v43 }
  0x2d   :  { %v173_v46 = vpop.eup %172  ;;  %v102_v47 = vadd.f32 1.0, %v171_v44  ;;  %v105_v51 = vmul.f32 -0.5, %v171_v44  ;;  %v108_v58 = vand.u32 2147483647, %v171_v44 }
  0x2e   :  { %v175_v48 = vpop.eup %174  ;;  %176 = vlog2.f32 %v93_v45  ;;  %v111_v49 = vadd.f32 1.0, %v173_v46  ;;  %v114_v53 = vmul.f32 -0.5, %v173_v46  ;;  %v97_v54 = vadd.f32 1.0, %v96_v50 }
  0x2f   :  { %178 = vlog2.f32 %v102_v47  ;;  %v120_v52 = vadd.f32 1.0, %v175_v48  ;;  %v123_v55 = vmul.f32 -0.5, %v175_v48  ;;  %v106_v57 = vadd.f32 1.0, %v105_v51 }
  0x30   :  { %180 = vlog2.f32 %v111_v49  ;;  %v115_v59 = vadd.f32 1.0, %v114_v53  ;;  %v117_v60 = vand.u32 2147483647, %v173_v46  ;;  %v98_v61 = vmul.f32 %v169_v43, %v97_v54 }
  0x31   :  { %182 = vlog2.f32 %v120_v52  ;;  %v124_v62 = vadd.f32 1.0, %v123_v55  ;;  %vm285_vm0 = vcmp.lt.f32.partialorder %v99_v56, 0.0004427343  ;;  %v107_v1 = vmul.f32 %v171_v44, %v106_v57 }
  0x32   :  { %v126_v2 = vand.u32 2147483647, %v175_v48  ;;  %vm290_vm2 = vcmp.lt.f32.partialorder %v108_v58, 0.0004427343  ;;  %v116_v6 = vmul.f32 %v173_v46, %v115_v59  ;;  %vm295_vm4 = vcmp.lt.f32.partialorder %v117_v60, 0.0004427343 }
  0x33   :  { %v125_v12 = vmul.f32 %v175_v48, %v124_v62 }
  0x34   :  { %vm127_vm7 = vcmp.lt.f32.partialorder %v126_v2, 0.0004427343 }
  0x38   :  { %v177_v63 = vpop.eup %176 }
  0x39   :  { %v179_v3 = vpop.eup %178  ;;  %v95_v4 = vmul.f32 0.6931472, %v177_v63 }
  0x3a   :  { %v181_v7 = vpop.eup %180  ;;  %v104_v8 = vmul.f32 0.6931472, %v179_v3 }
  0x3b   :  { %v101_v10 = vsel %vm285_vm0, %v98_v61, %v95_v4  ;;  %v113_v11 = vmul.f32 0.6931472, %v181_v7  ;;  %v183_v13 = vpop.eup %182 }
  0x3c   :  { %v129_v14 = vsel %vm77_vm1, %v273_v31, %v101_v10  ;;  %v110_v15 = vsel %vm290_vm2, %v107_v1, %v104_v8  ;;  %v122_v18 = vmul.f32 0.6931472, %v183_v13 }
  0x3d   :  { %184 = vtanh.f32 %v129_v14  ;;  %v130_v16 = vsel %vm78_vm3, %v275_v32, %v110_v15  ;;  %v119_v17 = vsel %vm295_vm4, %v116_v6, %v113_v11 }
  0x3e   :  { %186 = vtanh.f32 %v130_v16  ;;  %v131_v19 = vsel %vm79_vm5, %v277_v33, %v119_v17  ;;  %v128_v20 = vsel %vm127_vm7, %v125_v12, %v122_v18 }
  0x3f   :  { %188 = vtanh.f32 %v131_v19  ;;  %v132_v21 = vsel %vm80_vm6, %v279_v34, %v128_v20 }
  0x40   :  { %190 = vtanh.f32 %v132_v21 }
  0x47   :  { %v185_v22 = vpop.eup %184 }
  0x48   :  { %v187_v23 = vpop.eup %186  ;;  %v137_v24 = vmul.f32 %v185_v22, %v273_v31 }
  0x49   :  { %v189_v25 = vpop.eup %188  ;;  %v138_v26 = vmul.f32 %v187_v23, %v275_v32 }
  0x4a   :  { %141 = vst [vmem:[#allocation2] sm:$0xff] %v137_v24  ;;  %v139_v27 = vmul.f32 %v189_v25, %v277_v33  ;;  %v191_v28 = vpop.eup %190 }
  0x4b   :  { %142 = vst [vmem:[#allocation2 + $0x8] sm:$0xff] %v138_v26  ;;  %v140_v29 = vmul.f32 %v191_v28, %v279_v34 }
  0x4c   :  { %143 = vst [vmem:[#allocation2 + $0x10] sm:$0xff] %v139_v27 }
  0x4d   :  { %144 = vst [vmem:[#allocation2 + $0x18] sm:$0xff] %v140_v29 }
  0x4e   :  { %203 = shalt.err (!%p200_p4)
}
  0x4f   :  { %s204_s9 = scalar_lea.hbm %s332_s5, 512 }
  0x50   :  { %p205_p5 = scmp.ne.s32.totalorder %s332_s5, %s204_s9  ;;  %p208_p6 = scmp.lt.u32.totalorder %s204_s9, %s332_s5 }
  0x52   :  { %p210_p7 = pnand %p208_p6, %p205_p5 }
  0x54   :  { %213 = shalt.err (!%p210_p7)
}
  0x55   :  { %s217_s14 = smov 128   ;;  %s218_s15 = smov 8  }
  0x56   :  { %156 = dma.vmem_to_hbm [thread:$0]  %s151_s3, 512, %s332_s5, [#allocation3], %s217_s14, %s217_s14, %s218_s15  }
  0x57   :  { %214 = dma.done.wait [#allocation3], 512  }
  0x58   :  { %215 = vsyncadd [#allocation3], 4294966784 }
  0x59   :  { %160 = vsyncpa [#allocation3], 1 }

// kernel: hetero_gnn_forward.2
= control target key start
LH: loop header
LB: loop body
LE: loop exit
PB: predicated region body
PF: predicated region fallthrough
CT: control target
= control target key end

     0   :  { %v979_v1 = vmov 0   ;;  %vm474_vm0 = vcmask 261120   ;;  %s1178_s3 = inlined_call_operand.vmem [shape: bf16[128,384], index: 3, kind: input, shape index: {}]   ;;  %s1179_s1 = inlined_call_operand.vmem [shape: bf16[32,128], index: 1, kind: input, shape index: {}, may-alias: {0,1}]   ;;  %s1180_s4 = inlined_call_operand.vmem [shape: bf16[128,128], index: 4, kind: input, shape index: {}]   ;;  %s1181_s0 = inlined_call_operand.vmem [shape: bf16[32,128], index: 0, kind: input, shape index: {}, may-alias: {0,1}]   ;;  %s1182_s2 = inlined_call_operand.vmem [shape: bf16[3,32,32], index: 2, kind: input, shape index: {}]   ;;  %s1183_s5 = inlined_call_operand.vmem [shape: f32[1,128], index: 5, kind: input, shape index: {}]   ;;  %s1184_s6 = inlined_call_operand.vmem [shape: f32[32,128], index: 6, kind: output, shape index: {0}]   ;;  %s1185_s7 = inlined_call_operand.vmem [shape: f32[1,1,128], index: 7, kind: output, shape index: {1}]   ;;  %s1186_s8 = inlined_call_operand.vmem [shape: f32[1,1,128], index: 8, kind: output, shape index: {2}]  }
   0x1   :  { %v929_v0 = vld [vmem:[%s1178_s3 + $0x4] ss:$12 sps:$4 sm:$0xff]   ;;  %379 = vmatprep.mubr.bf16.mxu1 %v979_v1  ;;  %v931_v2 = vld [vmem:[%s1178_s3] ss:$12 sps:$4 sm:$0xff]   ;;  %v932_v3 = vld [vmem:[%s1178_s3 + $0x1c] ss:$12 sps:$4 sm:$0xff]  }
   0x2   :  { %347 = vmatprep.subr.bf16.mxu1 %v929_v0  ;;  %v934_v4 = vld [vmem:[%s1178_s3 + $0x18] ss:$12 sps:$4 sm:$0xff]   ;;  %v935_v5 = vld [vmem:[%s1178_s3 + $0x34] ss:$12 sps:$4 sm:$0xff]   ;;  %v937_v6 = vld [vmem:[%s1178_s3 + $0x30] ss:$12 sps:$4 sm:$0xff]  }
   0x3   :  { %348 = vmatpush1.bf16.msra.mxu1 %v931_v2  ;;  %v938_v7 = vld [vmem:[%s1178_s3 + $0x4c] ss:$12 sps:$4 sm:$0xff]   ;;  %v940_v8 = vld [vmem:[%s1178_s3 + $0x48] ss:$12 sps:$4 sm:$0xff]   ;;  %v941_v9 = vld [vmem:[%s1178_s3 + $0x64] ss:$12 sps:$4 sm:$0xff]  }
   0x4   :  { %349 = vmatprep.subr.bf16.mxu1 %v932_v3  ;;  %v943_v10 = vld [vmem:[%s1178_s3 + $0x60] ss:$12 sps:$4 sm:$0xff]   ;;  %v944_v11 = vld [vmem:[%s1178_s3 + $0x7c] ss:$12 sps:$4 sm:$0xff]   ;;  %v946_v12 = vld [vmem:[%s1178_s3 + $0x78] ss:$12 sps:$4 sm:$0xff]  }
   0x5   :  { %v947_v13 = vld [vmem:[%s1178_s3 + $0x94] ss:$12 sps:$4 sm:$0xff]   ;;  %v964_v15 = vld [vmem:[%s1180_s4 + $0x8] sm:$0xff]   ;;  %v949_v16 = vld [vmem:[%s1178_s3 + $0x90] ss:$12 sps:$4 sm:$0xff]  }
   0x6   :  { %v963_v14 = vld [vmem:[%s1180_s4] sm:$0xff]   ;;  %v950_v17 = vld [vmem:[%s1178_s3 + $0xac] ss:$12 sps:$4 sm:$0xff]   ;;  %v965_v18 = vld [vmem:[%s1180_s4 + $0x10] sm:$0xff]  }
   0x7   :  { %350 = vmatpush1.bf16.msra.mxu1 %v934_v4  ;;  %840 = vmatprep.subr.bf16.mxu0 %v963_v14  ;;  %v952_v19 = vld [vmem:[%s1178_s3 + $0xa8] ss:$12 sps:$4 sm:$0xff]   ;;  %v966_v21 = vld [vmem:[%s1180_s4 + $0x18] sm:$0xff]   ;;  %v953_v22 = vld [vmem:[%s1179_s1] sm:$0xff]  }
   0x8   :  { %351 = vmatprep.subr.bf16.mxu1 %v935_v5  ;;  %841 = vmatpush3.bf16.msra.mxu0 %v963_v14  ;;  %v954_v20 = vld [vmem:[%s1178_s3 + $0x8] ss:$12 sps:$4 sm:$0xff]   ;;  %v955_v23 = vld [vmem:[%s1178_s3 + $0x20] ss:$12 sps:$4 sm:$0xff]   ;;  %v957_v25 = vld [vmem:[%s1178_s3 + $0x38] ss:$12 sps:$4 sm:$0xff]  }
   0x9   :  { %842 = vmatprep.subr.bf16.mxu0 %v964_v15  ;;  %v967_v24 = vld [vmem:[%s1180_s4 + $0x20] sm:$0xff]   ;;  %v968_v26 = vld [vmem:[%s1180_s4 + $0x28] sm:$0xff]   ;;  %v958_v28 = vld [vmem:[%s1178_s3 + $0x50] ss:$12 sps:$4 sm:$0xff]  }
   0xa   :  { %v956_v27 = vld [vmem:[%s1179_s1 + $0x8] sm:$0xff]   ;;  %v969_v29 = vld [vmem:[%s1180_s4 + $0x30] sm:$0xff]   ;;  %v961_v32 = vld [vmem:[%s1178_s3 + $0x98] ss:$12 sps:$4 sm:$0xff]  }
   0xb   :  { %352 = vmatpush1.bf16.msra.mxu1 %v937_v6  ;;  %v959_v30 = vld [vmem:[%s1178_s3 + $0x68] ss:$12 sps:$4 sm:$0xff]   ;;  %v960_v31 = vld [vmem:[%s1178_s3 + $0x80] ss:$12 sps:$4 sm:$0xff]   ;;  %v962_v33 = vld [vmem:[%s1178_s3 + $0xb0] ss:$12 sps:$4 sm:$0xff]  }
   0xc   :  { %353 = vmatprep.subr.bf16.mxu1 %v938_v7  ;;  %843 = vmatpush3.bf16.msra.mxu0 %v964_v15  ;;  %v970_v34 = vld [vmem:[%s1180_s4 + $0x38] sm:$0xff]   ;;  %v971_v35 = vld [vmem:[%s1181_s0] sm:$0xff]   ;;  %v972_v36 = vld [vmem:[%s1181_s0 + $0x8] sm:$0xff]  }
   0xd   :  { %844 = vmatprep.subr.bf16.mxu0 %v965_v18  ;;  %856 = vmatprep.mubr.bf16.mxu0 %v971_v35  ;;  %v973_v37 = vld [vmem:[%s1182_s2 + $0x10] sm:$0xff]   ;;  %v974_v50 = vld [vmem:[%s1182_s2 + $0x18] sm:$0xff]   ;;  %v975_v51 = vld [vmem:[%s1182_s2] sm:$0xff]  }
   0xe   :  { %v976_v52 = vld [vmem:[%s1182_s2 + $0x8] sm:$0xff]   ;;  %v977_v53 = vld [vmem:[%s1182_s2 + $0x20] sm:$0xff]  }
   0xf   :  { %354 = vmatpush1.bf16.msra.mxu1 %v940_v8  ;;  %v978_v60 = vld [vmem:[%s1182_s2 + $0x28] sm:$0xff]   ;;  %v751_v61 = vld [vmem:[%s1183_s5] ss:$0 sm:$0xff] }
  0x10   :  { %355 = vmatprep.subr.bf16.mxu1 %v941_v9  ;;  %845 = vmatpush3.bf16.msra.mxu0 %v965_v18 }
  0x11   :  { %846 = vmatprep.subr.bf16.mxu0 %v966_v21 }
  0x13   :  { %356 = vmatpush1.bf16.msra.mxu1 %v943_v10 }
  0x14   :  { %357 = vmatprep.subr.bf16.mxu1 %v944_v11  ;;  %847 = vmatpush3.bf16.msra.mxu0 %v966_v21 }
  0x15   :  { %848 = vmatprep.subr.bf16.mxu0 %v967_v24 }
  0x17   :  { %358 = vmatpush1.bf16.msra.mxu1 %v946_v12 }
  0x18   :  { %359 = vmatprep.subr.bf16.mxu1 %v947_v13  ;;  %849 = vmatpush3.bf16.msra.mxu0 %v967_v24 }
  0x19   :  { %850 = vmatprep.subr.bf16.mxu0 %v968_v26 }
  0x1b   :  { %360 = vmatpush1.bf16.msra.mxu1 %v949_v16 }
  0x1c   :  { %361 = vmatprep.subr.bf16.mxu1 %v950_v17  ;;  %851 = vmatpush3.bf16.msra.mxu0 %v968_v26 }
  0x1d   :  { %852 = vmatprep.subr.bf16.mxu0 %v969_v29 }
  0x1f   :  { %362 = vmatpush1.bf16.msra.mxu1 %v952_v19 }
  0x20   :  { %860 = vmatprep.subr.bf16.mxu1 %v954_v20  ;;  %853 = vmatpush3.bf16.msra.mxu0 %v969_v29 }
  0x21   :  { %854 = vmatprep.subr.bf16.mxu0 %v970_v34 }
  0x22   :  { %380 = vmatmul.mubr.bf16.vlgmr.msra.gmra.mrb[0].mxu1 %v953_v22 }
  0x23   :  { %861 = vmatpush3.bf16.msra.mxu1 %v954_v20  ;;  %389 = vmatprep.mubr.bf16.mxu1 %v979_v1 }
  0x24   :  { %862 = vmatprep.subr.bf16.mxu1 %v955_v23  ;;  %855 = vmatpush3.bf16.msra.mxu0 %v970_v34 }
  0x27   :  { %863 = vmatpush3.bf16.msra.mxu1 %v955_v23  ;;  %857 = vmatmul.mubr.bf16.vlgmr.msra.gmra.mrb[0].mxu0 %v972_v36 }
  0x28   :  { %864 = vmatprep.subr.bf16.mxu1 %v957_v25  ;;  %884 = vmatprep.mubr.msk.bf16.mxu0 %vm474_vm0, %v973_v37 }
  0x2a   :  { %390 = vmatmul.mubr.bf16.gmra.mrb[4].mxu1 %v956_v27 }
  0x2b   :  { %865 = vmatpush3.bf16.msra.mxu1 %v957_v25  ;;  %876 = vmatprep.mubr.bf16.mxu1 %v953_v22 }
  0x2c   :  { %866 = vmatprep.subr.bf16.mxu1 %v958_v28 }
  0x2f   :  { %867 = vmatpush3.bf16.msra.mxu1 %v958_v28 }
  0x30   :  { %868 = vmatprep.subr.bf16.mxu1 %v959_v30 }
  0x33   :  { %869 = vmatpush3.bf16.msra.mxu1 %v959_v30 }
  0x34   :  { %870 = vmatprep.subr.bf16.mxu1 %v960_v31 }
  0x37   :  { %871 = vmatpush3.bf16.msra.mxu1 %v960_v31 }
  0x38   :  { %872 = vmatprep.subr.bf16.mxu1 %v961_v32 }
  0x3b   :  { %873 = vmatpush3.bf16.msra.mxu1 %v961_v32 }
  0x3c   :  { %874 = vmatprep.subr.bf16.mxu1 %v962_v33 }
  0x3f   :  { %875 = vmatpush3.bf16.msra.mxu1 %v962_v33 }
  0x42   :  { %877 = vmatmul.mubr.bf16.vlgmr.msra.gmra.mrb[8].mxu1 %v956_v27 }
  0xf5   :  { %v381_v38 = vpop.f32.mrb[0].mxu1 }
  0xf6   :  { %v383_v39 = vpop.f32.mrb[1].mxu1 }
  0xf7   :  { %v385_v40 = vpop.f32.mrb[2].mxu1 }
  0xf8   :  { %v449_v41 = vpack.c.bf16 %v385_v40, %v381_v38  ;;  %v387_v42 = vpop.f32.mrb[3].mxu1 }
  0xf9   :  { %v450_v43 = vpack.c.bf16 %v387_v42, %v383_v39 }
  0xfb   :  { %880 = vmatprep.subr.bf16.mxu0 %v450_v43 }
  0xfc   :  { %881 = vmatpush3.bf16.msra.mxu0 %v450_v43 }
  0xfd   :  { %v391_v44 = vpop.f32.mrb[4].mxu1 }
  0xfe   :  { %v393_v45 = vpop.f32.mrb[5].mxu1 }
  0xff   :  { %v395_v46 = vpop.f32.mrb[6].mxu1 }
 0x100   :  { %v452_v47 = vpack.c.bf16 %v395_v46, %v391_v44  ;;  %v397_v48 = vpop.f32.mrb[7].mxu1 }
 0x101   :  { %v453_v49 = vpack.c.bf16 %v397_v48, %v393_v45 }
 0x103   :  { %882 = vmatprep.subr.bf16.mxu0 %v453_v49 }
 0x104   :  { %883 = vmatpush3.bf16.msra.mxu0 %v453_v49 }
 0x105   :  { %888 = vmatprep.subr.bf16.mxu0 %v449_v41 }
 0x107   :  { %885 = vmatmul.mubr.msk.bf16.vlgmr.msra.gmra.mrb[0].mxu0 %vm474_vm0, %v974_v50 }
 0x108   :  { %889 = vmatpush3.bf16.msra.mxu0 %v449_v41  ;;  %892 = vmatprep.mubr.msk.bf16.mxu0 %vm474_vm0, %v975_v51 }
 0x109   :  { %890 = vmatprep.subr.bf16.mxu0 %v452_v47 }
 0x10c   :  { %891 = vmatpush3.bf16.msra.mxu0 %v452_v47 }
 0x113   :  { %893 = vmatmul.mubr.msk.bf16.vlgmr.msra.gmra.mrb[0].mxu0 %vm474_vm0, %v976_v52 }
 0x114   :  { %900 = vmatprep.mubr.msk.bf16.mxu0 %vm474_vm0, %v977_v53 }
 0x115   :  { %v878_v54 = vpop.f32.mrb[8].mxu1 }
 0x116   :  { %v434_v55 = vpop.f32.mrb[9].mxu1 }
 0x117   :  { %v879_v56 = vpop.f32.mrb[10].mxu1 }
 0x118   :  { %v454_v57 = vpack.c.bf16 %v879_v56, %v878_v54  ;;  %v437_v58 = vpop.f32.mrb[11].mxu1 }
 0x119   :  { %v451_v59 = vpack.c.bf16 %v437_v58, %v434_v55 }
 0x11b   :  { %896 = vmatprep.subr.bf16.mxu0 %v451_v59 }
 0x11c   :  { %897 = vmatpush3.bf16.msra.mxu0 %v451_v59 }
 0x11d   :  { %898 = vmatprep.subr.bf16.mxu0 %v454_v57 }
 0x120   :  { %899 = vmatpush3.bf16.msra.mxu0 %v454_v57 }
 0x123   :  { %901 = vmatmul.mubr.msk.bf16.vlgmr.msra.gmra.mrb[0].mxu0 %vm474_vm0, %v978_v60 }
 0x1f6   :  { %v902_v62 = vpop.f32.mrb[0].mxu0 }
 0x1f7   :  { %v906_v63 = vadd.f32 %v902_v62, %v751_v61  ;;  %v650_v0 = vpop.f32.mrb[1].mxu0 }
 0x1f8   :  { %v909_v1 = vadd.f32 %v751_v61, %v650_v0  ;;  %v903_v2 = vpop.f32.mrb[2].mxu0 }
 0x1f9   :  { %679 = vst [vmem:[%s1184_s6 + $0x10] sm:$0xff] %v906_v63  ;;  %v912_v3 = vadd.f32 %v903_v2, %v751_v61  ;;  %v653_v4 = vpop.f32.mrb[3].mxu0  ;;  %v727_v9 = vmul.f32 %v906_v63, %v906_v63 }
 0x1fa   :  { %677 = vst [vmem:[%s1184_s6] sm:$0xff] %v909_v1  ;;  %v915_v5 = vadd.f32 %v751_v61, %v653_v4  ;;  %v725_v6 = vmul.f32 %v909_v1, %v909_v1 }
 0x1fb   :  { %680 = vst [vmem:[%s1184_s6 + $0x18] sm:$0xff] %v912_v3  ;;  %v728_v12 = vmul.f32 %v912_v3, %v912_v3 }
 0x1fc   :  { %678 = vst [vmem:[%s1184_s6 + $0x8] sm:$0xff] %v915_v5  ;;  %v715_v7 = vadd.f32 %v915_v5, %v909_v1  ;;  %v726_v8 = vmul.f32 %v915_v5, %v915_v5 }
 0x1fe   :  { %v716_v10 = vadd.f32 %v906_v63, %v715_v7  ;;  %v729_v11 = vadd.f32 %v726_v8, %v725_v6 }
 0x200   :  { %v717_v13 = vadd.f32 %v912_v3, %v716_v10  ;;  %v730_v14 = vadd.f32 %v729_v11, %v727_v9 }
 0x202   :  { %v718_v15 = vrot.slane %v717_v13, 4  ;;  %v731_v16 = vadd.f32 %v730_v14, %v728_v12 }
 0x204   :  { %v719_v17 = vadd.f32 %v718_v15, %v717_v13  ;;  %v732_v18 = vrot.slane %v731_v16, 4 }
 0x206   :  { %v720_v19 = vrot.slane %v719_v17, 2  ;;  %v733_v20 = vadd.f32 %v732_v18, %v731_v16 }
 0x208   :  { %v721_v21 = vadd.f32 %v720_v19, %v719_v17  ;;  %v734_v22 = vrot.slane %v733_v20, 2 }
 0x20a   :  { %v722_v23 = vrot.slane %v721_v21, 1  ;;  %v735_v24 = vadd.f32 %v734_v22, %v733_v20 }
 0x20c   :  { %v723_v25 = vadd.f32 %v722_v23, %v721_v21  ;;  %v736_v26 = vrot.slane %v735_v24, 1 }
 0x20e   :  { %724 = vst [vmem:[%s1185_s7] sm:$0x1] %v723_v25  ;;  %v737_v27 = vadd.f32 %v736_v26, %v735_v24 }
 0x210   :  { %738 = vst [vmem:[%s1186_s8] sm:$0x1] %v737_v27 }

</bundles_post_ra>
